<compile_context>
chip_gen: v7x
topology: tpu7x:2x2x1
jax: 0.10.0
libtpu: 0.0.40
codegen_flags: <defaults>
</compile_context>

<pallas_src>
import functools

import jax
import jax.numpy as jnp
from jax import lax
from jax.experimental import pallas as pl
from jax.experimental.pallas import tpu as pltpu

_SQRT_HALF = 0.7071067811865476
_SQRT_2_OVER_PI = 0.7978845608028654


def _gelu(x, approximate=False):
    if approximate:
        # tanh formulation -> transcendental goes to the EUP slot (VALU relief).
        return 0.5 * x * (1.0 + jnp.tanh(_SQRT_2_OVER_PI * (x + 0.044715 * x * x * x)))
    # exact erf formulation == nn.GELU() default
    return 0.5 * x * (1.0 + lax.erf(x * _SQRT_HALF))


def ffn_kernel(x_ref, w1_ref, b1_ref, w2_ref, b2_ref, o_ref, *, approx_gelu, mxu_dtype):
    x = x_ref[...]
    batched = x.ndim == 3          # NCL path block: (1, C, tl)
    if batched:
        x = x[0]
    x = x.astype(jnp.float32)

    # fc1: GELU -> Conv1d(C->H, k=1, no bias) -> BN(H) -> GELU
    h = _gelu(x, approx_gelu)
    h = jnp.dot(w1_ref[...], h.astype(mxu_dtype), preferred_element_type=jnp.float32)
    h = _gelu(h + b1_ref[...], approx_gelu)      # b1: (H, 1) broadcasts over lanes

    # fc2: Conv1d(H->C, k=1, no bias) -> BN(C)
    y = jnp.dot(w2_ref[...], h.astype(mxu_dtype), preferred_element_type=jnp.float32)
    y = (y + b2_ref[...]).astype(o_ref.dtype)    # b2: (C, 1)

    if batched:
        o_ref[0] = y
    else:
        o_ref[...] = y


def _vmem_capacity_bytes():
    try:
        return int(pltpu.get_tpu_info().vmem_capacity_bytes)
    except Exception:
        return 64 << 20  # smallest current-gen per-TC VMEM (v7x); conservative


def _step_vmem_bytes(C, H, tile, w_itemsize, io_itemsize):
    io = 2 * 2 * C * tile * io_itemsize                       # double-buffered in + out blocks
    weights = (H * C + C * H) * w_itemsize + (H + C) * 4      # single-buffered weights + biases
    live = (H + C) * tile * 4                                 # live f32 intermediates
    return io + weights + live


def _pick_tile(length, C, H, w_itemsize, io_itemsize, budget):
    for cand in (2048, 1024, 512, 256, 128):
        if length % cand == 0 and _step_vmem_bytes(C, H, cand, w_itemsize, io_itemsize) <= budget:
            return cand
    return length  # full-extent block (always legal)


def _ffn_pallas_impl(x_ncl, w1, w2, s1, b1, s2, b2, *,
                     approx_gelu, bf16_matmul, single_buffer_weights):
    B, C, L = x_ncl.shape
    H = w1.shape[0]

    mxu_dtype = jnp.bfloat16 if bf16_matmul else jnp.float32
    w_itemsize = jnp.dtype(mxu_dtype).itemsize
    io_itemsize = jnp.dtype(x_ncl.dtype).itemsize

    # Fold eval-mode BN scale into conv weight rows: s*(W @ x) == (s[:,None]*W) @ x
    w1s = (w1.astype(jnp.float32) * s1[:, None]).astype(mxu_dtype)
    w2s = (w2.astype(jnp.float32) * s2[:, None]).astype(mxu_dtype)
    b1c = b1.reshape(H, 1).astype(jnp.float32)
    b2c = b2.reshape(C, 1).astype(jnp.float32)

    kernel = functools.partial(ffn_kernel, approx_gelu=approx_gelu, mxu_dtype=mxu_dtype)

    cap = _vmem_capacity_bytes()
    budget = min(cap // 2, 64 << 20)

    def weight_specs(index_map):
        kw = {"pipeline_mode": pl.Buffered(1)} if single_buffer_weights else {}
        return [
            pl.BlockSpec((H, C), index_map, **kw),
            pl.BlockSpec((H, 1), index_map, **kw),
            pl.BlockSpec((C, H), index_map, **kw),
            pl.BlockSpec((C, 1), index_map, **kw),
        ]

    if L >= 128:
        # ---- Path A: native NCL layout, L on lanes (no wrapper transpose) ----
        tl = _pick_tile(L, C, H, w_itemsize, io_itemsize, budget)
        if B * (L // tl) < 2 and tl % 256 == 0:
            tl //= 2  # keep >= 2 parallel grid steps (v7x has 2 TensorCores)
        need = _step_vmem_bytes(C, H, tl, w_itemsize, io_itemsize)
        vmem_limit = int(min(max(2 * need, 32 << 20), cap * 3 // 4))
        return pl.pallas_call(
            kernel,
            out_shape=jax.ShapeDtypeStruct((B, C, L), x_ncl.dtype),
            grid_spec=pltpu.PrefetchScalarGridSpec(
                num_scalar_prefetch=0,
                grid=(B, L // tl),
                in_specs=[pl.BlockSpec((1, C, tl), lambda b, l: (b, 0, l))]
                + weight_specs(lambda b, l: (0, 0)),
                out_specs=pl.BlockSpec((1, C, tl), lambda b, l: (b, 0, l)),
            ),
            compiler_params=pltpu.CompilerParams(
                dimension_semantics=("parallel", "parallel"),
                vmem_limit_bytes=vmem_limit,
            ),
        )(x_ncl, w1s, b1c, w2s, b2c)

    # ---- Path B: small L. Flatten B*L onto lanes (k=1 convs are position-wise),
    # pad to a multiple of 128 so stores are unmasked, full-lane vst. ----
    N = B * L
    Np = ((N + 127) // 128) * 128
    x2d = jnp.transpose(x_ncl, (1, 0, 2)).reshape(C, N)
    if Np != N:
        x2d = jnp.pad(x2d, ((0, 0), (0, Np - N)))

    tn = _pick_tile(Np, C, H, w_itemsize, io_itemsize, budget)
    if (Np // tn) < 2 and tn % 256 == 0:
        tn //= 2
    need = _step_vmem_bytes(C, H, tn, w_itemsize, io_itemsize)
    vmem_limit = int(min(max(2 * need, 32 << 20), cap * 3 // 4))

    y2d = pl.pallas_call(
        kernel,
        out_shape=jax.ShapeDtypeStruct((C, Np), x_ncl.dtype),
        grid_spec=pltpu.PrefetchScalarGridSpec(
            num_scalar_prefetch=0,
            grid=(Np // tn,),
            in_specs=[pl.BlockSpec((C, tn), lambda n: (0, n))]
            + weight_specs(lambda n: (0, 0)),
            out_specs=pl.BlockSpec((C, tn), lambda n: (0, n)),
        ),
        compiler_params=pltpu.CompilerParams(
            dimension_semantics=("parallel",),
            vmem_limit_bytes=vmem_limit,
        ),
    )(x2d, w1s, b1c, w2s, b2c)

    y = y2d[:, :N].reshape(C, B, L)
    return jnp.transpose(y, (1, 0, 2))


def ffn_pallas(x_ncl, w1, w2, s1, b1, s2, b2, *, approx_gelu=False, bf16_matmul=False):
    """FFN forward. x_ncl: (B, C, L); w1: (H, C); w2: (C, H); s*/b*: folded BN."""
    try:
        return _ffn_pallas_impl(x_ncl, w1, w2, s1, b1, s2, b2,
                                approx_gelu=approx_gelu, bf16_matmul=bf16_matmul,
                                single_buffer_weights=True)
    except Exception:
        # TODO(synk): this JAX build rejected pl.Buffered(1); fall back to default
        # double-buffered weight operands (correct, slightly more VMEM).
        return _ffn_pallas_impl(x_ncl, w1, w2, s1, b1, s2, b2,
                                approx_gelu=approx_gelu, bf16_matmul=bf16_matmul,
                                single_buffer_weights=False)


def ffn_reference(x_ncl, w1, w2, s1, b1, s2, b2):
    h = _gelu(x_ncl)
    h = jnp.einsum("hc,bcl->bhl", w1, h)
    h = h * s1[None, :, None] + b1[None, :, None]
    h = _gelu(h)
    y = jnp.einsum("ch,bhl->bcl", w2, h)
    y = y * s2[None, :, None] + b2[None, :, None]
    return y


def _make_params(key, C, H, eps=1e-5):
    ks = jax.random.split(key, 7)
    w1 = jax.random.normal(ks[0], (H, C), dtype=jnp.float32) * 0.1   # conv1: C -> H
    w2 = jax.random.normal(ks[1], (C, H), dtype=jnp.float32) * 0.1   # conv2: H -> C
    gamma1 = 1.0 + 0.1 * jax.random.normal(ks[2], (H,), dtype=jnp.float32)
    beta1 = 0.1 * jax.random.normal(ks[3], (H,), dtype=jnp.float32)
    rmean1 = 0.05 * jax.random.normal(ks[4], (H,), dtype=jnp.float32)
    rvar1 = jnp.abs(1.0 + 0.1 * jax.random.normal(ks[5], (H,), dtype=jnp.float32))
    gamma2 = jnp.ones((C,), jnp.float32)
    beta2 = jnp.zeros((C,), jnp.float32)
    rmean2 = jnp.zeros((C,), jnp.float32)
    rvar2 = jnp.ones((C,), jnp.float32)
    inv1 = gamma1 / jnp.sqrt(rvar1 + eps)
    inv2 = gamma2 / jnp.sqrt(rvar2 + eps)
    return w1, w2, inv1, beta1 - rmean1 * inv1, inv2, beta2 - rmean2 * inv2


if __name__ == "__main__":
    key = jax.random.PRNGKey(0)
    k_x1, k_x2, k_p = jax.random.split(key, 3)

    # feature_dim=16, expansion_factor=4  ->  H = 64
    C, expansion = 16, 4
    H = C * expansion
    w1, w2, s1, b1, s2, b2 = _make_params(k_p, C, H)

    # Case 1: small L (exercises the flattened / lane-padded path).
    B, L = 2, 16
    x = jax.random.normal(k_x1, (B, C, L), dtype=jnp.float32)
    out = jax.block_until_ready(ffn_pallas(x, w1, w2, s1, b1, s2, b2))
    ref = ffn_reference(x, w1, w2, s1, b1, s2, b2)
    assert out.shape == (B, C, L)
    assert jnp.allclose(out, ref, atol=1e-4, rtol=1e-4), "mismatch (small-L path)"

    # Case 2: lane-friendly L (exercises the native NCL tiled path).
    B2, L2 = 1, 256
    x2 = jax.random.normal(k_x2, (B2, C, L2), dtype=jnp.float32)
    out2 = jax.block_until_ready(ffn_pallas(x2, w1, w2, s1, b1, s2, b2))
    ref2 = ffn_reference(x2, w1, w2, s1, b1, s2, b2)
    assert out2.shape == (B2, C, L2)
    assert jnp.allclose(out2, ref2, atol=1e-4, rtol=1e-4), "mismatch (NCL path)"

    print("KERNEL_OK")
</pallas_src>

<mosaic_0001>
module attributes {stable_mosaic.version = 11 : i64} {
  func.func @ffn_kernel(%arg0: i32, %arg1: memref<16x128xf32, #tpu.memory_space<vmem>>, %arg2: memref<64x16xf32, #tpu.memory_space<vmem>>, %arg3: memref<64x1xf32, #tpu.memory_space<vmem>>, %arg4: memref<16x64xf32, #tpu.memory_space<vmem>>, %arg5: memref<16x1xf32, #tpu.memory_space<vmem>>, %arg6: memref<16x128xf32, #tpu.memory_space<vmem>>) attributes {dimension_semantics = [#tpu.dimension_semantics<parallel>], iteration_bounds = array<i64: 1>, scalar_prefetch = 0 : i64, scratch_operands = 0 : i64, tpu.core_type = #tpu.core_type<tc>, window_params = [{transform_indices = @transform_0, window_bounds = array<i64: 16, 128>}, {pipeline_mode = #tpu.pipeline_mode<synchronous>, transform_indices = @transform_1, window_bounds = array<i64: 64, 16>}, {pipeline_mode = #tpu.pipeline_mode<synchronous>, transform_indices = @transform_2, window_bounds = array<i64: 64, 1>}, {pipeline_mode = #tpu.pipeline_mode<synchronous>, transform_indices = @transform_3, window_bounds = array<i64: 16, 64>}, {pipeline_mode = #tpu.pipeline_mode<synchronous>, transform_indices = @transform_4, window_bounds = array<i64: 16, 1>}, {transform_indices = @transform_5, window_bounds = array<i64: 16, 128>}]} {
    %c0 = arith.constant 0 : index
    %c0_0 = arith.constant 0 : index
    %0 = vector.load %arg1[%c0, %c0_0] : memref<16x128xf32, #tpu.memory_space<vmem>>, vector<16x128xf32>
    %cst = arith.constant 5.000000e-01 : f32
    %1 = vector.broadcast %cst : f32 to vector<16x128xf32>
    %2 = arith.mulf %1, %0 : vector<16x128xf32>
    %cst_1 = arith.constant 0.707106769 : f32
    %3 = vector.broadcast %cst_1 : f32 to vector<16x128xf32>
    %4 = arith.mulf %0, %3 : vector<16x128xf32>
    %5 = math.erf %4 : vector<16x128xf32>
    %cst_2 = arith.constant 1.000000e+00 : f32
    %6 = vector.broadcast %cst_2 : f32 to vector<16x128xf32>
    %7 = arith.addf %6, %5 : vector<16x128xf32>
    %8 = arith.mulf %2, %7 : vector<16x128xf32>
    %c0_3 = arith.constant 0 : index
    %c0_4 = arith.constant 0 : index
    %9 = vector.load %arg2[%c0_3, %c0_4] : memref<64x16xf32, #tpu.memory_space<vmem>>, vector<64x16xf32>
    %cst_5 = arith.constant dense<0.000000e+00> : vector<64x128xf32>
    %10 = tpu.matmul %9, %8, %cst_5 {dimension_numbers = #tpu.dot_dimension_numbers<[1], [0], [0], [1], [0, 0, 1, 1], [], []>} : vector<64x16xf32>, vector<16x128xf32>, vector<64x128xf32> -> vector<64x128xf32>
    %c0_6 = arith.constant 0 : index
    %c0_7 = arith.constant 0 : index
    %11 = vector.load %arg3[%c0_6, %c0_7] : memref<64x1xf32, #tpu.memory_space<vmem>>, vector<64x1xf32>
    %12 = vector.broadcast %11 : vector<64x1xf32> to vector<64x128xf32>
    %13 = arith.addf %10, %12 : vector<64x128xf32>
    %cst_8 = arith.constant 5.000000e-01 : f32
    %14 = vector.broadcast %cst_8 : f32 to vector<64x128xf32>
    %15 = arith.mulf %14, %13 : vector<64x128xf32>
    %cst_9 = arith.constant 0.707106769 : f32
    %16 = vector.broadcast %cst_9 : f32 to vector<64x128xf32>
    %17 = arith.mulf %13, %16 : vector<64x128xf32>
    %18 = math.erf %17 : vector<64x128xf32>
    %cst_10 = arith.constant 1.000000e+00 : f32
    %19 = vector.broadcast %cst_10 : f32 to vector<64x128xf32>
    %20 = arith.addf %19, %18 : vector<64x128xf32>
    %21 = arith.mulf %15, %20 : vector<64x128xf32>
    %c0_11 = arith.constant 0 : index
    %c0_12 = arith.constant 0 : index
    %22 = vector.load %arg4[%c0_11, %c0_12] : memref<16x64xf32, #tpu.memory_space<vmem>>, vector<16x64xf32>
    %cst_13 = arith.constant dense<0.000000e+00> : vector<16x128xf32>
    %23 = tpu.matmul %22, %21, %cst_13 {dimension_numbers = #tpu.dot_dimension_numbers<[1], [0], [0], [1], [0, 0, 1, 1], [], []>} : vector<16x64xf32>, vector<64x128xf32>, vector<16x128xf32> -> vector<16x128xf32>
    %c0_14 = arith.constant 0 : index
    %c0_15 = arith.constant 0 : index
    %24 = vector.load %arg5[%c0_14, %c0_15] : memref<16x1xf32, #tpu.memory_space<vmem>>, vector<16x1xf32>
    %25 = vector.broadcast %24 : vector<16x1xf32> to vector<16x128xf32>
    %26 = arith.addf %23, %25 : vector<16x128xf32>
    %c0_16 = arith.constant 0 : index
    %c0_17 = arith.constant 0 : index
    %27 = vector.load %arg6[%c0_16, %c0_17] : memref<16x128xf32, #tpu.memory_space<vmem>>, vector<16x128xf32>
    tpu.vector_store %arg6[%c0_16, %c0_17], %26 {strides = array<i32>} : memref<16x128xf32, #tpu.memory_space<vmem>>, vector<16x128xf32>,
    return
  }
  func.func @transform_0(%arg0: i32) -> (i32, i32) {
    %c0_i32 = arith.constant 0 : i32
    %c0_i32_0 = arith.constant 0 : i32
    return %c0_i32, %arg0 : i32, i32
  }
  func.func @transform_1(%arg0: i32) -> (i32, i32) {
    %c0_i32 = arith.constant 0 : i32
    %c0_i32_0 = arith.constant 0 : i32
    %c0_i32_1 = arith.constant 0 : i32
    return %c0_i32, %c0_i32_0 : i32, i32
  }
  func.func @transform_2(%arg0: i32) -> (i32, i32) {
    %c0_i32 = arith.constant 0 : i32
    %c0_i32_0 = arith.constant 0 : i32
    %c0_i32_1 = arith.constant 0 : i32
    return %c0_i32, %c0_i32_0 : i32, i32
  }
  func.func @transform_3(%arg0: i32) -> (i32, i32) {
    %c0_i32 = arith.constant 0 : i32
    %c0_i32_0 = arith.constant 0 : i32
    %c0_i32_1 = arith.constant 0 : i32
    return %c0_i32, %c0_i32_0 : i32, i32
  }
  func.func @transform_4(%arg0: i32) -> (i32, i32) {
    %c0_i32 = arith.constant 0 : i32
    %c0_i32_0 = arith.constant 0 : i32
    %c0_i32_1 = arith.constant 0 : i32
    return %c0_i32, %c0_i32_0 : i32, i32
  }
  func.func @transform_5(%arg0: i32) -> (i32, i32) {
    %c0_i32 = arith.constant 0 : i32
    %c0_i32_0 = arith.constant 0 : i32
    return %c0_i32, %arg0 : i32, i32
  }
}

module attributes {stable_mosaic.version = 11 : i64} {
  func.func @ffn_kernel(%arg0: i32, %arg1: memref<16x128xf32, #tpu.memory_space<vmem>>, %arg2: memref<64x16xf32, #tpu.memory_space<vmem>>, %arg3: memref<64x1xf32, #tpu.memory_space<vmem>>, %arg4: memref<16x64xf32, #tpu.memory_space<vmem>>, %arg5: memref<16x1xf32, #tpu.memory_space<vmem>>, %arg6: memref<16x128xf32, #tpu.memory_space<vmem>>) attributes {dimension_semantics = [#tpu.dimension_semantics<parallel>], iteration_bounds = array<i64: 1>, scalar_prefetch = 0 : i64, scratch_operands = 0 : i64, tpu.core_type = #tpu.core_type<tc>, window_params = [{transform_indices = @transform_0, window_bounds = array<i64: 16, 128>}, {pipeline_mode = #tpu.pipeline_mode<synchronous>, transform_indices = @transform_1, window_bounds = array<i64: 64, 16>}, {pipeline_mode = #tpu.pipeline_mode<synchronous>, transform_indices = @transform_2, window_bounds = array<i64: 64, 1>}, {pipeline_mode = #tpu.pipeline_mode<synchronous>, transform_indices = @transform_3, window_bounds = array<i64: 16, 64>}, {pipeline_mode = #tpu.pipeline_mode<synchronous>, transform_indices = @transform_4, window_bounds = array<i64: 16, 1>}, {transform_indices = @transform_5, window_bounds = array<i64: 16, 128>}]} {
    %c0 = arith.constant 0 : index
    %c0_0 = arith.constant 0 : index
    %0 = vector.load %arg1[%c0, %c0_0] : memref<16x128xf32, #tpu.memory_space<vmem>>, vector<16x128xf32>
    %cst = arith.constant 5.000000e-01 : f32
    %1 = vector.broadcast %cst : f32 to vector<16x128xf32>
    %2 = arith.mulf %1, %0 : vector<16x128xf32>
    %cst_1 = arith.constant 0.707106769 : f32
    %3 = vector.broadcast %cst_1 : f32 to vector<16x128xf32>
    %4 = arith.mulf %0, %3 : vector<16x128xf32>
    %5 = math.erf %4 : vector<16x128xf32>
    %cst_2 = arith.constant 1.000000e+00 : f32
    %6 = vector.broadcast %cst_2 : f32 to vector<16x128xf32>
    %7 = arith.addf %6, %5 : vector<16x128xf32>
    %8 = arith.mulf %2, %7 : vector<16x128xf32>
    %c0_3 = arith.constant 0 : index
    %c0_4 = arith.constant 0 : index
    %9 = vector.load %arg2[%c0_3, %c0_4] : memref<64x16xf32, #tpu.memory_space<vmem>>, vector<64x16xf32>
    %cst_5 = arith.constant dense<0.000000e+00> : vector<64x128xf32>
    %10 = tpu.matmul %9, %8, %cst_5 {dimension_numbers = #tpu.dot_dimension_numbers<[1], [0], [0], [1], [0, 0, 1, 1], [], []>} : vector<64x16xf32>, vector<16x128xf32>, vector<64x128xf32> -> vector<64x128xf32>
    %c0_6 = arith.constant 0 : index
    %c0_7 = arith.constant 0 : index
    %11 = vector.load %arg3[%c0_6, %c0_7] : memref<64x1xf32, #tpu.memory_space<vmem>>, vector<64x1xf32>
    %12 = vector.broadcast %11 : vector<64x1xf32> to vector<64x128xf32>
    %13 = arith.addf %10, %12 : vector<64x128xf32>
    %cst_8 = arith.constant 5.000000e-01 : f32
    %14 = vector.broadcast %cst_8 : f32 to vector<64x128xf32>
    %15 = arith.mulf %14, %13 : vector<64x128xf32>
    %cst_9 = arith.constant 0.707106769 : f32
    %16 = vector.broadcast %cst_9 : f32 to vector<64x128xf32>
    %17 = arith.mulf %13, %16 : vector<64x128xf32>
    %18 = math.erf %17 : vector<64x128xf32>
    %cst_10 = arith.constant 1.000000e+00 : f32
    %19 = vector.broadcast %cst_10 : f32 to vector<64x128xf32>
    %20 = arith.addf %19, %18 : vector<64x128xf32>
    %21 = arith.mulf %15, %20 : vector<64x128xf32>
    %c0_11 = arith.constant 0 : index
    %c0_12 = arith.constant 0 : index
    %22 = vector.load %arg4[%c0_11, %c0_12] : memref<16x64xf32, #tpu.memory_space<vmem>>, vector<16x64xf32>
    %cst_13 = arith.constant dense<0.000000e+00> : vector<16x128xf32>
    %23 = tpu.matmul %22, %21, %cst_13 {dimension_numbers = #tpu.dot_dimension_numbers<[1], [0], [0], [1], [0, 0, 1, 1], [], []>} : vector<16x64xf32>, vector<64x128xf32>, vector<16x128xf32> -> vector<16x128xf32>
    %c0_14 = arith.constant 0 : index
    %c0_15 = arith.constant 0 : index
    %24 = vector.load %arg5[%c0_14, %c0_15] : memref<16x1xf32, #tpu.memory_space<vmem>>, vector<16x1xf32>
    %25 = vector.broadcast %24 : vector<16x1xf32> to vector<16x128xf32>
    %26 = arith.addf %23, %25 : vector<16x128xf32>
    %c0_16 = arith.constant 0 : index
    %c0_17 = arith.constant 0 : index
    %27 = vector.load %arg6[%c0_16, %c0_17] : memref<16x128xf32, #tpu.memory_space<vmem>>, vector<16x128xf32>
    tpu.vector_store %arg6[%c0_16, %c0_17], %26 {strides = array<i32>} : memref<16x128xf32, #tpu.memory_space<vmem>>, vector<16x128xf32>,
    return
  }
  func.func @transform_0(%arg0: i32) -> (i32, i32) {
    %c0_i32 = arith.constant 0 : i32
    %c0_i32_0 = arith.constant 0 : i32
    return %c0_i32, %arg0 : i32, i32
  }
  func.func @transform_1(%arg0: i32) -> (i32, i32) {
    %c0_i32 = arith.constant 0 : i32
    %c0_i32_0 = arith.constant 0 : i32
    %c0_i32_1 = arith.constant 0 : i32
    return %c0_i32, %c0_i32_0 : i32, i32
  }
  func.func @transform_2(%arg0: i32) -> (i32, i32) {
    %c0_i32 = arith.constant 0 : i32
    %c0_i32_0 = arith.constant 0 : i32
    %c0_i32_1 = arith.constant 0 : i32
    return %c0_i32, %c0_i32_0 : i32, i32
  }
  func.func @transform_3(%arg0: i32) -> (i32, i32) {
    %c0_i32 = arith.constant 0 : i32
    %c0_i32_0 = arith.constant 0 : i32
    %c0_i32_1 = arith.constant 0 : i32
    return %c0_i32, %c0_i32_0 : i32, i32
  }
  func.func @transform_4(%arg0: i32) -> (i32, i32) {
    %c0_i32 = arith.constant 0 : i32
    %c0_i32_0 = arith.constant 0 : i32
    %c0_i32_1 = arith.constant 0 : i32
    return %c0_i32, %c0_i32_0 : i32, i32
  }
  func.func @transform_5(%arg0: i32) -> (i32, i32) {
    %c0_i32 = arith.constant 0 : i32
    %c0_i32_0 = arith.constant 0 : i32
    return %c0_i32, %arg0 : i32, i32
  }
}

</mosaic_0001>

<bundles_post_ra>
// kernel: tpu_custom_call.1
= control target key start
LH: loop header
LB: loop body
LE: loop exit
PB: predicated region body
PF: predicated region fallthrough
CT: control target
= control target key end

     0   :  { %vm89_vm0 = vcmask 130048   ;;  %v508_v5 = vmov 0   ;;  %s630_s0 = inlined_call_operand.vmem [shape: f32[16,128], index: 0, kind: input, shape index: {}]   ;;  %s631_s1 = inlined_call_operand.vmem [shape: f32[64,16], index: 1, kind: input, shape index: {}]   ;;  %s632_s2 = inlined_call_operand.vmem [shape: f32[64,1], index: 2, kind: input, shape index: {}]   ;;  %s633_s3 = inlined_call_operand.vmem [shape: f32[16,64], index: 3, kind: input, shape index: {}]   ;;  %s634_s4 = inlined_call_operand.vmem [shape: f32[16,1], index: 4, kind: input, shape index: {}]   ;;  %s635_s5 = inlined_call_operand.hbm [shape: f32[16,128], index: 5, kind: output, shape index: {}]  }
   0x1   :  { %v21_v0 = vld [vmem:[%s630_s0] sm:$0xff]  ;;  %v22_v1 = vld [vmem:[%s630_s0 + $0x8] sm:$0xff]  ;;  %462 = vset.pattern.permute.xlu0 %v508_v5  ;;  %463 = vset.pattern.permute.xlu1 %v508_v5  ;;  %v43_v7 = vld [vmem:[%s632_s2 + $0x10] sm:$0xff] }
   0x2   :  { %v33_v2 = vld [vmem:[%s631_s1] sm:$0xff]  ;;  %v25_v3 = vmul.f32 0.70710677, %v21_v0  ;;  %v26_v4 = vmul.f32 0.70710677, %v22_v1  ;;  %61 = vperm.xlu1 %463, %v43_v7   ;;  %v42_v8 = vld [vmem:[%s632_s2 + $0x8] sm:$0xff] }
   0x3   :  { %407 = vmatprep.mubr.msk.f32.mxu0 %vm89_vm0, %v33_v2  ;;  %v41_v6 = vld [vmem:[%s632_s2] sm:$0xff]  ;;  %v44_v9 = vld [vmem:[%s632_s2 + $0x18] sm:$0xff] }
   0x4   :  { %464 = verf.f32 %v25_v3  ;;  %51 = vperm.xlu0 %462, %v41_v6  }
   0x5   :  { %466 = verf.f32 %v26_v4 }
   0x6   :  { %10 = vsyncpa [#allocation3], 0  ;;  %66 = vperm.xlu1 %463, %v44_v9   ;;  %v45_v10 = vld [vmem:[%s632_s2 + $0x20] sm:$0xff]  ;;  %v46_v11 = vld [vmem:[%s632_s2 + $0x28] sm:$0xff]  ;;  %v23_v12 = vmul.f32 0.5, %v21_v0  ;;  %v24_v14 = vmul.f32 0.5, %v22_v1 }
   0x7   :  { %v47_v17 = vld [vmem:[%s632_s2 + $0x30] sm:$0xff]  ;;  %v48_v18 = vld [vmem:[%s632_s2 + $0x38] sm:$0xff]  ;;  %v261_v22 = vld [vmem:[%s634_s4] sm:$0xff]  ;;  %vm273_vm1 = vcmask 523264   ;;  %s509_s7 = smov [#allocation2]  }
   0x8   :  { %56 = vperm.xlu0 %462, %v42_v8   ;;  %v262_v24 = vld [vmem:[%s634_s4 + $0x8] sm:$0xff]  ;;  %v35_v26 = vld [vmem:[%s631_s1 + $0x10] sm:$0xff]  ;;  %v36_v27 = vld [vmem:[%s631_s1 + $0x18] sm:$0xff]  ;;  %s362_s8 = sshll.u32 %s509_s7, 4  ;;  %s363_s8 = int_to_ptr.vmem [resolvable:$true] %s362_s8 }
   0x9   :  { %v34_v25 = vld [vmem:[%s631_s1 + $0x8] sm:$0xff]  ;;  %v37_v28 = vld [vmem:[%s631_s1 + $0x20] sm:$0xff]  ;;  %v39_v30 = vld [vmem:[%s631_s1 + $0x30] sm:$0xff]  ;;  %s484_s9 = scalar_lea.vmem %s363_s8, 256  ;;  %p489_p1 = scmp.lt.s32.totalorder %s363_s8, %s363_s8 }
   0xa   :  { %76 = vperm.xlu1 %463, %v46_v11   ;;  %v38_v29 = vld [vmem:[%s631_s1 + $0x28] sm:$0xff]  ;;  %v40_v31 = vld [vmem:[%s631_s1 + $0x38] sm:$0xff]  ;;  %v259_v32 = vld [vmem:[%s633_s3] sm:$0xff]  ;;  %p485_p0 = scmp.ne.s32.totalorder %s363_s8, %s484_s9  ;;  %p490_p2 = scmp.lt.s32.totalorder %s484_s9, %s484_s9 }
   0xb   :  { %435 = vmatprep.mubr.msk.f32.mxu1 %vm273_vm1, %v259_v32 }
   0xc   :  { %71 = vperm.xlu0 %462, %v45_v10   ;;  %p491_p3 = por %p490_p2, %p489_p1 }
   0xe   :  { %v465_v13 = vpop.eup %464  ;;  %86 = vperm.xlu1 %463, %v48_v18   ;;  %p492_p4 = pnand %p491_p3, %p485_p0 }
   0xf   :  { %v467_v15 = vpop.eup %466  ;;  %v29_v16 = vadd.f32 1.0, %v465_v13 }
  0x10   :  { %v30_v19 = vadd.f32 1.0, %v467_v15  ;;  %81 = vperm.xlu0 %462, %v47_v17  }
  0x11   :  { %v31_v20 = vmul.f32 %v29_v16, %v23_v12 }
  0x12   :  { %v32_v21 = vmul.f32 %v30_v19, %v24_v14  ;;  %270 = vperm.xlu1 %463, %v262_v24  }
  0x14   :  { %v438_v23 = vpack.c.bf16 %v32_v21, %v31_v20  ;;  %265 = vperm.xlu0 %462, %v261_v22  }
  0x16   :  { %439 = vmatprep.subr.bf16.mxu0 %v438_v23 }
  0x17   :  { %441 = vmatpush3.bf16.msra.mxu0 %v438_v23 }
  0x1a   :  { %408 = vmatmul.mubr.msk.f32.vlgmr.msra.gmra.mrb[0].mxu0 %vm89_vm0, %v34_v25 }
  0x1b   :  { %410 = vmatprep.mubr.msk.f32.mxu0 %vm89_vm0, %v35_v26 }
  0x1e   :  { %411 = vmatmul.mubr.msk.f32.gmra.mrb[2].mxu0 %vm89_vm0, %v36_v27 }
  0x1f   :  { %413 = vmatprep.mubr.msk.f32.mxu0 %vm89_vm0, %v37_v28 }
  0x22   :  { %414 = vmatmul.mubr.msk.f32.gmra.mrb[4].mxu0 %vm89_vm0, %v38_v29 }
  0x23   :  { %416 = vmatprep.mubr.msk.f32.mxu0 %vm89_vm0, %v39_v30 }
  0x26   :  { %417 = vmatmul.mubr.msk.f32.gmra.mrb[6].mxu0 %vm89_vm0, %v40_v31 }
  0x81   :  { %v62_v34 = vpop.permute.xlu1 %61 }
  0x83   :  { %v52_v33 = vpop.permute.xlu0 %51 }
  0x85   :  { %v67_v36 = vpop.permute.xlu1 %66 }
  0x87   :  { %v57_v35 = vpop.permute.xlu0 %56 }
  0x89   :  { %v77_v46 = vpop.permute.xlu1 %76 }
  0x8b   :  { %v72_v48 = vpop.permute.xlu0 %71 }
  0x8d   :  { %v87_v56 = vpop.permute.xlu1 %86 }
  0x8f   :  { %v82_v59 = vpop.permute.xlu0 %81 }
  0xed   :  { %v409_v37 = vpop.f32.mrb[0].mxu0 }
  0xee   :  { %v186_v38 = vadd.f32 %v409_v37, %v57_v35  ;;  %v180_v39 = vpop.f32.mrb[1].mxu0  ;;  %v260_v37 = vld [vmem:[%s633_s3 + $0x8] sm:$0xff] }
  0xef   :  { %v181_v40 = vadd.f32 %v180_v39, %v52_v33 }
  0xf0   :  { %v228_v41 = vmul.f32 0.70710677, %v186_v38  ;;  %v220_v2 = vmul.f32 0.5, %v186_v38  ;;  %v271_v38 = vpop.permute.xlu1 %270 }
  0xf1   :  { %v227_v42 = vmul.f32 0.70710677, %v181_v40  ;;  %v412_v43 = vpop.f32.mrb[2].mxu0  ;;  %v219_v5 = vmul.f32 0.5, %v181_v40  ;;  %v266_v40 = vpop.permute.xlu0 %265 }
  0xf2   :  { %468 = verf.f32 %v228_v41  ;;  %v196_v44 = vadd.f32 %v412_v43, %v67_v36  ;;  %v190_v45 = vpop.f32.mrb[3].mxu0 }
  0xf3   :  { %470 = verf.f32 %v227_v42  ;;  %v191_v47 = vadd.f32 %v190_v45, %v62_v34 }
  0xf4   :  { %v230_v49 = vmul.f32 0.70710677, %v196_v44  ;;  %v222_v11 = vmul.f32 0.5, %v196_v44 }
  0xf5   :  { %v229_v50 = vmul.f32 0.70710677, %v191_v47  ;;  %v415_v51 = vpop.f32.mrb[4].mxu0  ;;  %v221_v13 = vmul.f32 0.5, %v191_v47 }
  0xf6   :  { %472 = verf.f32 %v230_v49  ;;  %v206_v52 = vadd.f32 %v415_v51, %v77_v46  ;;  %v200_v53 = vpop.f32.mrb[5].mxu0 }
  0xf7   :  { %474 = verf.f32 %v229_v50  ;;  %v201_v54 = vadd.f32 %v200_v53, %v72_v48 }
  0xf8   :  { %v232_v55 = vmul.f32 0.70710677, %v206_v52  ;;  %v224_v20 = vmul.f32 0.5, %v206_v52 }
  0xf9   :  { %v231_v57 = vmul.f32 0.70710677, %v201_v54  ;;  %v418_v58 = vpop.f32.mrb[6].mxu0  ;;  %v223_v22 = vmul.f32 0.5, %v201_v54 }
  0xfa   :  { %476 = verf.f32 %v232_v55  ;;  %v216_v60 = vadd.f32 %v418_v58, %v87_v56  ;;  %v210_v61 = vpop.f32.mrb[7].mxu0 }
  0xfb   :  { %478 = verf.f32 %v231_v57  ;;  %v211_v62 = vadd.f32 %v210_v61, %v82_v59 }
  0xfc   :  { %v469_v63 = vpop.eup %468  ;;  %v234_v0 = vmul.f32 0.70710677, %v216_v60  ;;  %v226_v29 = vmul.f32 0.5, %v216_v60 }
  0xfd   :  { %v471_v1 = vpop.eup %470  ;;  %v233_v3 = vmul.f32 0.70710677, %v211_v62  ;;  %v244_v4 = vadd.f32 1.0, %v469_v63  ;;  %v225_v31 = vmul.f32 0.5, %v211_v62 }
  0xfe   :  { %480 = verf.f32 %v234_v0  ;;  %v243_v6 = vadd.f32 1.0, %v471_v1 }
  0xff   :  { %482 = verf.f32 %v233_v3  ;;  %v252_v7 = vmul.f32 %v244_v4, %v220_v2 }
 0x100   :  { %v473_v8 = vpop.eup %472  ;;  %v251_v9 = vmul.f32 %v243_v6, %v219_v5 }
 0x101   :  { %v475_v10 = vpop.eup %474  ;;  %v246_v12 = vadd.f32 1.0, %v473_v8 }
 0x102   :  { %v245_v14 = vadd.f32 1.0, %v475_v10  ;;  %v442_v15 = vpack.c.bf16 %v252_v7, %v251_v9 }
 0x103   :  { %v254_v16 = vmul.f32 %v246_v12, %v222_v11 }
 0x104   :  { %v477_v17 = vpop.eup %476  ;;  %v253_v18 = vmul.f32 %v245_v14, %v221_v13  ;;  %443 = vmatprep.subr.bf16.mxu1 %v442_v15 }
 0x105   :  { %v479_v19 = vpop.eup %478  ;;  %v248_v21 = vadd.f32 1.0, %v477_v17  ;;  %445 = vmatpush3.bf16.msra.mxu1 %v442_v15 }
 0x106   :  { %v247_v23 = vadd.f32 1.0, %v479_v19  ;;  %v446_v24 = vpack.c.bf16 %v254_v16, %v253_v18 }
 0x107   :  { %v256_v25 = vmul.f32 %v248_v21, %v224_v20 }
 0x108   :  { %v481_v26 = vpop.eup %480  ;;  %v255_v27 = vmul.f32 %v247_v23, %v223_v22  ;;  %447 = vmatprep.subr.bf16.mxu1 %v446_v24 }
 0x109   :  { %v483_v28 = vpop.eup %482  ;;  %v250_v30 = vadd.f32 1.0, %v481_v26  ;;  %449 = vmatpush3.bf16.msra.mxu1 %v446_v24 }
 0x10a   :  { %v249_v32 = vadd.f32 1.0, %v483_v28  ;;  %v450_v33 = vpack.c.bf16 %v256_v25, %v255_v27 }
 0x10b   :  { %v258_v34 = vmul.f32 %v250_v30, %v226_v29 }
 0x10c   :  { %v257_v35 = vmul.f32 %v249_v32, %v225_v31  ;;  %451 = vmatprep.subr.bf16.mxu1 %v450_v33 }
 0x10d   :  { %453 = vmatpush3.bf16.msra.mxu1 %v450_v33 }
 0x10e   :  { %v454_v36 = vpack.c.bf16 %v258_v34, %v257_v35 }
 0x110   :  { %455 = vmatprep.subr.bf16.mxu1 %v454_v36 }
 0x111   :  { %457 = vmatpush3.bf16.msra.mxu1 %v454_v36 }
 0x114   :  { %436 = vmatmul.mubr.msk.f32.vlgmr.msra.gmra.mrb[0].mxu1 %vm273_vm1, %v260_v37 }
 0x1e7   :  { %v437_v39 = vpop.f32.mrb[0].mxu1 }
 0x1e8   :  { %v352_v41 = vadd.f32 %v437_v39, %v271_v38  ;;  %v346_v42 = vpop.f32.mrb[1].mxu1 }
 0x1e9   :  { %v347_v43 = vadd.f32 %v346_v42, %v266_v40 }
 0x1ea   :  { %356 = vst [vmem:[#allocation2 + $0x8] sm:$0xff] %v352_v41 }
 0x1eb   :  { %355 = vst [vmem:[#allocation2] sm:$0xff] %v347_v43 }
 0x1ec   :  { %495 = shalt.err (!%p492_p4)
}
 0x1ed   :  { %s496_s11 = scalar_lea.hbm %s635_s5, 256 }
 0x1ee   :  { %p497_p5 = scmp.ne.s32.totalorder %s635_s5, %s496_s11  ;;  %p500_p6 = scmp.lt.u32.totalorder %s496_s11, %s635_s5 }
 0x1f0   :  { %p502_p7 = pnand %p500_p6, %p497_p5 }
 0x1f2   :  { %505 = shalt.err (!%p502_p7)
}
 0x1f3   :  { %s510_s16 = smov 128   ;;  %s511_s17 = smov 8  }
 0x1f4   :  { %368 = dma.vmem_to_hbm [thread:$0]  %s363_s8, 256, %s635_s5, [#allocation3], %s510_s16, %s510_s16, %s511_s17  }
 0x1f5   :  { %506 = dma.done.wait [#allocation3], 256  }
 0x1f6   :  { %507 = vsyncadd [#allocation3], 4294967040 }
 0x1f7   :  { %372 = vsyncpa [#allocation3], 1 }

// kernel: tpu_custom_call.1
= control target key start
LH: loop header
LB: loop body
LE: loop exit
PB: predicated region body
PF: predicated region fallthrough
CT: control target
= control target key end

     0   :  { %vm89_vm0 = vcmask 130048   ;;  %v508_v5 = vmov 0   ;;  %s630_s0 = inlined_call_operand.vmem [shape: f32[16,128], index: 0, kind: input, shape index: {}]   ;;  %s631_s1 = inlined_call_operand.vmem [shape: f32[64,16], index: 1, kind: input, shape index: {}]   ;;  %s632_s2 = inlined_call_operand.vmem [shape: f32[64,1], index: 2, kind: input, shape index: {}]   ;;  %s633_s3 = inlined_call_operand.vmem [shape: f32[16,64], index: 3, kind: input, shape index: {}]   ;;  %s634_s4 = inlined_call_operand.vmem [shape: f32[16,1], index: 4, kind: input, shape index: {}]   ;;  %s635_s5 = inlined_call_operand.hbm [shape: f32[16,128], index: 5, kind: output, shape index: {}]  }
   0x1   :  { %v21_v0 = vld [vmem:[%s630_s0] sm:$0xff]  ;;  %v22_v1 = vld [vmem:[%s630_s0 + $0x8] sm:$0xff]  ;;  %462 = vset.pattern.permute.xlu0 %v508_v5  ;;  %463 = vset.pattern.permute.xlu1 %v508_v5  ;;  %v43_v7 = vld [vmem:[%s632_s2 + $0x10] sm:$0xff] }
   0x2   :  { %v33_v2 = vld [vmem:[%s631_s1] sm:$0xff]  ;;  %v25_v3 = vmul.f32 0.70710677, %v21_v0  ;;  %v26_v4 = vmul.f32 0.70710677, %v22_v1  ;;  %61 = vperm.xlu1 %463, %v43_v7   ;;  %v42_v8 = vld [vmem:[%s632_s2 + $0x8] sm:$0xff] }
   0x3   :  { %407 = vmatprep.mubr.msk.f32.mxu0 %vm89_vm0, %v33_v2  ;;  %v41_v6 = vld [vmem:[%s632_s2] sm:$0xff]  ;;  %v44_v9 = vld [vmem:[%s632_s2 + $0x18] sm:$0xff] }
   0x4   :  { %464 = verf.f32 %v25_v3  ;;  %51 = vperm.xlu0 %462, %v41_v6  }
   0x5   :  { %466 = verf.f32 %v26_v4 }
   0x6   :  { %10 = vsyncpa [#allocation3], 0  ;;  %66 = vperm.xlu1 %463, %v44_v9   ;;  %v45_v10 = vld [vmem:[%s632_s2 + $0x20] sm:$0xff]  ;;  %v46_v11 = vld [vmem:[%s632_s2 + $0x28] sm:$0xff]  ;;  %v23_v12 = vmul.f32 0.5, %v21_v0  ;;  %v24_v14 = vmul.f32 0.5, %v22_v1 }
   0x7   :  { %v47_v17 = vld [vmem:[%s632_s2 + $0x30] sm:$0xff]  ;;  %v48_v18 = vld [vmem:[%s632_s2 + $0x38] sm:$0xff]  ;;  %v261_v22 = vld [vmem:[%s634_s4] sm:$0xff]  ;;  %vm273_vm1 = vcmask 523264   ;;  %s509_s7 = smov [#allocation2]  }
   0x8   :  { %56 = vperm.xlu0 %462, %v42_v8   ;;  %v262_v24 = vld [vmem:[%s634_s4 + $0x8] sm:$0xff]  ;;  %v35_v26 = vld [vmem:[%s631_s1 + $0x10] sm:$0xff]  ;;  %v36_v27 = vld [vmem:[%s631_s1 + $0x18] sm:$0xff]  ;;  %s362_s8 = sshll.u32 %s509_s7, 4  ;;  %s363_s8 = int_to_ptr.vmem [resolvable:$true] %s362_s8 }
   0x9   :  { %v34_v25 = vld [vmem:[%s631_s1 + $0x8] sm:$0xff]  ;;  %v37_v28 = vld [vmem:[%s631_s1 + $0x20] sm:$0xff]  ;;  %v39_v30 = vld [vmem:[%s631_s1 + $0x30] sm:$0xff]  ;;  %s484_s9 = scalar_lea.vmem %s363_s8, 256  ;;  %p489_p1 = scmp.lt.s32.totalorder %s363_s8, %s363_s8 }
   0xa   :  { %76 = vperm.xlu1 %463, %v46_v11   ;;  %v38_v29 = vld [vmem:[%s631_s1 + $0x28] sm:$0xff]  ;;  %v40_v31 = vld [vmem:[%s631_s1 + $0x38] sm:$0xff]  ;;  %v259_v32 = vld [vmem:[%s633_s3] sm:$0xff]  ;;  %p485_p0 = scmp.ne.s32.totalorder %s363_s8, %s484_s9  ;;  %p490_p2 = scmp.lt.s32.totalorder %s484_s9, %s484_s9 }
   0xb   :  { %435 = vmatprep.mubr.msk.f32.mxu1 %vm273_vm1, %v259_v32 }
   0xc   :  { %71 = vperm.xlu0 %462, %v45_v10   ;;  %p491_p3 = por %p490_p2, %p489_p1 }
   0xe   :  { %v465_v13 = vpop.eup %464  ;;  %86 = vperm.xlu1 %463, %v48_v18   ;;  %p492_p4 = pnand %p491_p3, %p485_p0 }
   0xf   :  { %v467_v15 = vpop.eup %466  ;;  %v29_v16 = vadd.f32 1.0, %v465_v13 }
  0x10   :  { %v30_v19 = vadd.f32 1.0, %v467_v15  ;;  %81 = vperm.xlu0 %462, %v47_v17  }
  0x11   :  { %v31_v20 = vmul.f32 %v29_v16, %v23_v12 }
  0x12   :  { %v32_v21 = vmul.f32 %v30_v19, %v24_v14  ;;  %270 = vperm.xlu1 %463, %v262_v24  }
  0x14   :  { %v438_v23 = vpack.c.bf16 %v32_v21, %v31_v20  ;;  %265 = vperm.xlu0 %462, %v261_v22  }
  0x16   :  { %439 = vmatprep.subr.bf16.mxu0 %v438_v23 }
  0x17   :  { %441 = vmatpush3.bf16.msra.mxu0 %v438_v23 }
  0x1a   :  { %408 = vmatmul.mubr.msk.f32.vlgmr.msra.gmra.mrb[0].mxu0 %vm89_vm0, %v34_v25 }
  0x1b   :  { %410 = vmatprep.mubr.msk.f32.mxu0 %vm89_vm0, %v35_v26 }
  0x1e   :  { %411 = vmatmul.mubr.msk.f32.gmra.mrb[2].mxu0 %vm89_vm0, %v36_v27 }
  0x1f   :  { %413 = vmatprep.mubr.msk.f32.mxu0 %vm89_vm0, %v37_v28 }
  0x22   :  { %414 = vmatmul.mubr.msk.f32.gmra.mrb[4].mxu0 %vm89_vm0, %v38_v29 }
  0x23   :  { %416 = vmatprep.mubr.msk.f32.mxu0 %vm89_vm0, %v39_v30 }
  0x26   :  { %417 = vmatmul.mubr.msk.f32.gmra.mrb[6].mxu0 %vm89_vm0, %v40_v31 }
  0x81   :  { %v62_v34 = vpop.permute.xlu1 %61 }
  0x83   :  { %v52_v33 = vpop.permute.xlu0 %51 }
  0x85   :  { %v67_v36 = vpop.permute.xlu1 %66 }
  0x87   :  { %v57_v35 = vpop.permute.xlu0 %56 }
  0x89   :  { %v77_v46 = vpop.permute.xlu1 %76 }
  0x8b   :  { %v72_v48 = vpop.permute.xlu0 %71 }
  0x8d   :  { %v87_v56 = vpop.permute.xlu1 %86 }
  0x8f   :  { %v82_v59 = vpop.permute.xlu0 %81 }
  0xed   :  { %v409_v37 = vpop.f32.mrb[0].mxu0 }
  0xee   :  { %v186_v38 = vadd.f32 %v409_v37, %v57_v35  ;;  %v180_v39 = vpop.f32.mrb[1].mxu0  ;;  %v260_v37 = vld [vmem:[%s633_s3 + $0x8] sm:$0xff] }
  0xef   :  { %v181_v40 = vadd.f32 %v180_v39, %v52_v33 }
  0xf0   :  { %v228_v41 = vmul.f32 0.70710677, %v186_v38  ;;  %v220_v2 = vmul.f32 0.5, %v186_v38  ;;  %v271_v38 = vpop.permute.xlu1 %270 }
  0xf1   :  { %v227_v42 = vmul.f32 0.70710677, %v181_v40  ;;  %v412_v43 = vpop.f32.mrb[2].mxu0  ;;  %v219_v5 = vmul.f32 0.5, %v181_v40  ;;  %v266_v40 = vpop.permute.xlu0 %265 }
  0xf2   :  { %468 = verf.f32 %v228_v41  ;;  %v196_v44 = vadd.f32 %v412_v43, %v67_v36  ;;  %v190_v45 = vpop.f32.mrb[3].mxu0 }
  0xf3   :  { %470 = verf.f32 %v227_v42  ;;  %v191_v47 = vadd.f32 %v190_v45, %v62_v34 }
  0xf4   :  { %v230_v49 = vmul.f32 0.70710677, %v196_v44  ;;  %v222_v11 = vmul.f32 0.5, %v196_v44 }
  0xf5   :  { %v229_v50 = vmul.f32 0.70710677, %v191_v47  ;;  %v415_v51 = vpop.f32.mrb[4].mxu0  ;;  %v221_v13 = vmul.f32 0.5, %v191_v47 }
  0xf6   :  { %472 = verf.f32 %v230_v49  ;;  %v206_v52 = vadd.f32 %v415_v51, %v77_v46  ;;  %v200_v53 = vpop.f32.mrb[5].mxu0 }
  0xf7   :  { %474 = verf.f32 %v229_v50  ;;  %v201_v54 = vadd.f32 %v200_v53, %v72_v48 }
  0xf8   :  { %v232_v55 = vmul.f32 0.70710677, %v206_v52  ;;  %v224_v20 = vmul.f32 0.5, %v206_v52 }
  0xf9   :  { %v231_v57 = vmul.f32 0.70710677, %v201_v54  ;;  %v418_v58 = vpop.f32.mrb[6].mxu0  ;;  %v223_v22 = vmul.f32 0.5, %v201_v54 }
  0xfa   :  { %476 = verf.f32 %v232_v55  ;;  %v216_v60 = vadd.f32 %v418_v58, %v87_v56  ;;  %v210_v61 = vpop.f32.mrb[7].mxu0 }
  0xfb   :  { %478 = verf.f32 %v231_v57  ;;  %v211_v62 = vadd.f32 %v210_v61, %v82_v59 }
  0xfc   :  { %v469_v63 = vpop.eup %468  ;;  %v234_v0 = vmul.f32 0.70710677, %v216_v60  ;;  %v226_v29 = vmul.f32 0.5, %v216_v60 }
  0xfd   :  { %v471_v1 = vpop.eup %470  ;;  %v233_v3 = vmul.f32 0.70710677, %v211_v62  ;;  %v244_v4 = vadd.f32 1.0, %v469_v63  ;;  %v225_v31 = vmul.f32 0.5, %v211_v62 }
  0xfe   :  { %480 = verf.f32 %v234_v0  ;;  %v243_v6 = vadd.f32 1.0, %v471_v1 }
  0xff   :  { %482 = verf.f32 %v233_v3  ;;  %v252_v7 = vmul.f32 %v244_v4, %v220_v2 }
 0x100   :  { %v473_v8 = vpop.eup %472  ;;  %v251_v9 = vmul.f32 %v243_v6, %v219_v5 }
 0x101   :  { %v475_v10 = vpop.eup %474  ;;  %v246_v12 = vadd.f32 1.0, %v473_v8 }
 0x102   :  { %v245_v14 = vadd.f32 1.0, %v475_v10  ;;  %v442_v15 = vpack.c.bf16 %v252_v7, %v251_v9 }
 0x103   :  { %v254_v16 = vmul.f32 %v246_v12, %v222_v11 }
 0x104   :  { %v477_v17 = vpop.eup %476  ;;  %v253_v18 = vmul.f32 %v245_v14, %v221_v13  ;;  %443 = vmatprep.subr.bf16.mxu1 %v442_v15 }
 0x105   :  { %v479_v19 = vpop.eup %478  ;;  %v248_v21 = vadd.f32 1.0, %v477_v17  ;;  %445 = vmatpush3.bf16.msra.mxu1 %v442_v15 }
 0x106   :  { %v247_v23 = vadd.f32 1.0, %v479_v19  ;;  %v446_v24 = vpack.c.bf16 %v254_v16, %v253_v18 }
 0x107   :  { %v256_v25 = vmul.f32 %v248_v21, %v224_v20 }
 0x108   :  { %v481_v26 = vpop.eup %480  ;;  %v255_v27 = vmul.f32 %v247_v23, %v223_v22  ;;  %447 = vmatprep.subr.bf16.mxu1 %v446_v24 }
 0x109   :  { %v483_v28 = vpop.eup %482  ;;  %v250_v30 = vadd.f32 1.0, %v481_v26  ;;  %449 = vmatpush3.bf16.msra.mxu1 %v446_v24 }
 0x10a   :  { %v249_v32 = vadd.f32 1.0, %v483_v28  ;;  %v450_v33 = vpack.c.bf16 %v256_v25, %v255_v27 }
 0x10b   :  { %v258_v34 = vmul.f32 %v250_v30, %v226_v29 }
 0x10c   :  { %v257_v35 = vmul.f32 %v249_v32, %v225_v31  ;;  %451 = vmatprep.subr.bf16.mxu1 %v450_v33 }
 0x10d   :  { %453 = vmatpush3.bf16.msra.mxu1 %v450_v33 }
 0x10e   :  { %v454_v36 = vpack.c.bf16 %v258_v34, %v257_v35 }
 0x110   :  { %455 = vmatprep.subr.bf16.mxu1 %v454_v36 }
 0x111   :  { %457 = vmatpush3.bf16.msra.mxu1 %v454_v36 }
 0x114   :  { %436 = vmatmul.mubr.msk.f32.vlgmr.msra.gmra.mrb[0].mxu1 %vm273_vm1, %v260_v37 }
 0x1e7   :  { %v437_v39 = vpop.f32.mrb[0].mxu1 }
 0x1e8   :  { %v352_v41 = vadd.f32 %v437_v39, %v271_v38  ;;  %v346_v42 = vpop.f32.mrb[1].mxu1 }
 0x1e9   :  { %v347_v43 = vadd.f32 %v346_v42, %v266_v40 }
 0x1ea   :  { %356 = vst [vmem:[#allocation2 + $0x8] sm:$0xff] %v352_v41 }
 0x1eb   :  { %355 = vst [vmem:[#allocation2] sm:$0xff] %v347_v43 }
 0x1ec   :  { %495 = shalt.err (!%p492_p4)
}
 0x1ed   :  { %s496_s11 = scalar_lea.hbm %s635_s5, 256 }
 0x1ee   :  { %p497_p5 = scmp.ne.s32.totalorder %s635_s5, %s496_s11  ;;  %p500_p6 = scmp.lt.u32.totalorder %s496_s11, %s635_s5 }
 0x1f0   :  { %p502_p7 = pnand %p500_p6, %p497_p5 }
 0x1f2   :  { %505 = shalt.err (!%p502_p7)
}
 0x1f3   :  { %s510_s16 = smov 128   ;;  %s511_s17 = smov 8  }
 0x1f4   :  { %368 = dma.vmem_to_hbm [thread:$0]  %s363_s8, 256, %s635_s5, [#allocation3], %s510_s16, %s510_s16, %s511_s17  }
 0x1f5   :  { %506 = dma.done.wait [#allocation3], 256  }
 0x1f6   :  { %507 = vsyncadd [#allocation3], 4294967040 }
 0x1f7   :  { %372 = vsyncpa [#allocation3], 1 }

</bundles_post_ra>
